<compile_context>
chip_gen: v7x
topology: tpu7x:2x2x1
jax: 0.10.0
libtpu: 0.0.40
codegen_flags: <defaults>
</compile_context>

<pallas_src>
import functools

import jax
import jax.numpy as jnp
from jax import lax
from jax.experimental import pallas as pl
from jax.experimental.pallas import tpu as pltpu

_LANES = 128
_MAX_TILE_ROWS = 2048      # 2048 * 128 * 4B = 1 MiB f32 block per input per step
_PAD_X = -1.0e4            # sigmoid(_PAD_X) == 0 and bce(_PAD_X, 0) == 0 exactly in f32


def _round_up(v: int, m: int) -> int:
    return ((v + m - 1) // m) * m


def _dice_bce_kernel(x_ref, t_ref, out_ref, *, rows, need_mask):
    """Accumulate per-(sublane, lane) partial sums into the resident output.

    out_ref rows (each an (8, 128) slab, reduced in plain-JAX glue):
      0: sum of element-wise BCE-with-logits terms
      1: sum of sigmoid(x) * t          (dice intersection)
      2: sum of sigmoid(x) + t          (dice denominator)
    """
    i = pl.program_id(0)

    @pl.when(i == 0)
    def _():
        out_ref[...] = jnp.zeros_like(out_ref)

    x = x_ref[...].astype(jnp.float32)          # (tile_r, 128)
    t = t_ref[...].astype(jnp.float32)

    if need_mask:
        # Last tile may overrun the (rows, 128) array: substitute values that
        # contribute exactly zero to every partial sum (select is NaN-safe).
        tile_r = x.shape[0]
        row_idx = lax.broadcasted_iota(jnp.int32, (tile_r, 1), 0) + i * tile_r
        valid = row_idx < rows
        x = jnp.where(valid, x, _PAD_X)
        t = jnp.where(valid, t, 0.0)

    # Shared transcendental: e = exp(-|x|) reused for log1p term and sigmoid.
    e = jnp.exp(-jnp.abs(x))
    denom = 1.0 + e
    # Numerically stable BCE-with-logits (same formulation as PyTorch):
    #   max(x, 0) - x*t + log(1 + exp(-|x|))
    bce = jnp.maximum(x, 0.0) - x * t + jnp.log1p(e)
    # sigmoid(x) = where(x >= 0, 1, e) / (1 + e); approx recip + Newton step.
    r = pl.reciprocal(denom, approx=True)
    r = r * (2.0 - denom * r)                   # VPU refinement, ~f32 exact
    p = jnp.where(x >= 0.0, 1.0, e) * r

    g = x.shape[0] // 8                         # tile_r is a multiple of 8
    out_ref[0] += bce.reshape(g, 8, _LANES).sum(axis=0)
    out_ref[1] += (p * t).reshape(g, 8, _LANES).sum(axis=0)
    out_ref[2] += (p + t).reshape(g, 8, _LANES).sum(axis=0)


def _elementwise_sums(x, t):
    """Plain-JAX sums for the tiny (<128 element) lane remainder."""
    x = x.astype(jnp.float32)
    t = t.astype(jnp.float32)
    e = jnp.exp(-jnp.abs(x))
    bce = jnp.maximum(x, 0.0) - x * t + jnp.log1p(e)
    p = jnp.where(x >= 0.0, 1.0, e) / (1.0 + e)
    return jnp.stack([jnp.sum(bce), jnp.sum(p * t), jnp.sum(p + t)])


def dice_bce_loss(inputs, targets, smooth: float = 1.0):
    """DiceBCELoss forward: BCEWithLogitsLoss(inputs, targets) + dice loss."""
    n_total = inputs.size
    x_flat = inputs.reshape(-1)
    t_flat = targets.reshape(-1)

    rows = n_total // _LANES
    n_main = rows * _LANES

    sums = jnp.zeros((3,), jnp.float32)

    if rows > 0:
        if n_main == n_total:
            x2d = x_flat.reshape(rows, _LANES)          # free row-major reshape
            t2d = t_flat.reshape(rows, _LANES)
        else:
            x2d = x_flat[:n_main].reshape(rows, _LANES)
            t2d = t_flat[:n_main].reshape(rows, _LANES)

        tile_r = min(_MAX_TILE_ROWS, _round_up(rows, 8))
        num_tiles = -(-rows // tile_r)
        need_mask = (rows % tile_r) != 0                # static Python bool

        partial = pl.pallas_call(
            functools.partial(_dice_bce_kernel, rows=rows, need_mask=need_mask),
            out_shape=jax.ShapeDtypeStruct((3, 8, _LANES), jnp.float32),
            grid_spec=pltpu.PrefetchScalarGridSpec(
                num_scalar_prefetch=0,
                grid=(num_tiles,),
                in_specs=[
                    pl.BlockSpec((tile_r, _LANES), lambda i: (i, 0)),
                    pl.BlockSpec((tile_r, _LANES), lambda i: (i, 0)),
                ],
                out_specs=pl.BlockSpec((3, 8, _LANES), lambda i: (0, 0, 0)),
            ),
            compiler_params=pltpu.CompilerParams(
                dimension_semantics=("arbitrary",),
            ),
        )(x2d, t2d)
        sums = sums + jnp.sum(partial, axis=(1, 2))

    if n_main != n_total:
        # <=127-element lane remainder handled in plain-JAX glue (negligible).
        sums = sums + _elementwise_sums(x_flat[n_main:], t_flat[n_main:])

    bce_mean = sums[0] / jnp.float32(n_total)
    dice_loss = 1.0 - (2.0 * sums[1] + smooth) / (sums[2] + smooth)
    return bce_mean + dice_loss


def _reference(inputs, targets, smooth=1.0):
    """Pure-JAX reference mirroring the PyTorch module."""
    x = inputs.astype(jnp.float32)
    t = targets.astype(jnp.float32)
    bce = jnp.mean(jnp.maximum(x, 0.0) - x * t + jnp.log1p(jnp.exp(-jnp.abs(x))))
    p = jax.nn.sigmoid(x).reshape(-1)
    tf = t.reshape(-1)
    inter = jnp.sum(p * tf)
    dice = 1.0 - (2.0 * inter + smooth) / (jnp.sum(p) + jnp.sum(tf) + smooth)
    return bce + dice


if __name__ == "__main__":
    key = jax.random.PRNGKey(0)
    k1, k2, k3, k4 = jax.random.split(key, 4)

    # NCHW logits + binary targets, lane-divisible case.
    x = jax.random.normal(k1, (2, 4, 16, 16), dtype=jnp.float32)
    tgt = (jax.random.uniform(k2, (2, 4, 16, 16)) > 0.5).astype(jnp.float32)
    out = jax.block_until_ready(dice_bce_loss(x, tgt))
    ref = jax.block_until_ready(_reference(x, tgt))
    assert jnp.allclose(out, ref, rtol=1e-5, atol=1e-5), (out, ref)

    # Ragged case: exercises in-kernel row masking + plain-JAX lane tail.
    x2 = jax.random.normal(k3, (3, 5, 7, 11), dtype=jnp.float32)
    tgt2 = (jax.random.uniform(k4, (3, 5, 7, 11)) > 0.5).astype(jnp.float32)
    out2 = jax.block_until_ready(dice_bce_loss(x2, tgt2))
    ref2 = jax.block_until_ready(_reference(x2, tgt2))
    assert jnp.allclose(out2, ref2, rtol=1e-5, atol=1e-5), (out2, ref2)

    print("KERNEL_OK")
</pallas_src>

<mosaic_0001>
module attributes {stable_mosaic.version = 11 : i64} {
  func.func @_dice_bce_kernel(%arg0: i32, %arg1: memref<16x128xf32, #tpu.memory_space<vmem>>, %arg2: memref<16x128xf32, #tpu.memory_space<vmem>>, %arg3: memref<3x8x128xf32, #tpu.memory_space<vmem>>) attributes {dimension_semantics = [#tpu.dimension_semantics<arbitrary>], iteration_bounds = array<i64: 1>, scalar_prefetch = 0 : i64, scratch_operands = 0 : i64, tpu.core_type = #tpu.core_type<tc>, window_params = [{transform_indices = @transform_0, window_bounds = array<i64: 16, 128>}, {transform_indices = @transform_1, window_bounds = array<i64: 16, 128>}, {pipeline_mode = #tpu.pipeline_mode<synchronous>, transform_indices = @transform_2, window_bounds = array<i64: 3, 8, 128>}]} {
    %c0_i32 = arith.constant 0 : i32
    %0 = arith.cmpi eq, %arg0, %c0_i32 : i32
    %1 = arith.extui %0 : i1 to i32
    %c0_i32_0 = arith.constant 0 : i32
    %2 = arith.cmpi ne, %1, %c0_i32_0 : i32
    scf.if %2 {
      %cst_28 = arith.constant 0.000000e+00 : f32
      %53 = vector.broadcast %cst_28 : f32 to vector<3x8x128xf32>
      %c0_29 = arith.constant 0 : index
      %c0_30 = arith.constant 0 : index
      %c0_31 = arith.constant 0 : index
      %54 = vector.load %arg3[%c0_29, %c0_30, %c0_31] : memref<3x8x128xf32, #tpu.memory_space<vmem>>, vector<3x8x128xf32>
      tpu.vector_store %arg3[%c0_29, %c0_30, %c0_31], %53 {strides = array<i32>} : memref<3x8x128xf32, #tpu.memory_space<vmem>>, vector<3x8x128xf32>,
    } else {
    }
    %c0 = arith.constant 0 : index
    %c0_1 = arith.constant 0 : index
    %3 = vector.load %arg1[%c0, %c0_1] : memref<16x128xf32, #tpu.memory_space<vmem>>, vector<16x128xf32>
    %c0_2 = arith.constant 0 : index
    %c0_3 = arith.constant 0 : index
    %4 = vector.load %arg2[%c0_2, %c0_3] : memref<16x128xf32, #tpu.memory_space<vmem>>, vector<16x128xf32>
    %5 = math.absf %3 : vector<16x128xf32>
    %cst = arith.constant 0.000000e+00 : f32
    %6 = vector.broadcast %cst : f32 to vector<16x128xf32>
    %7 = arith.subf %6, %5 : vector<16x128xf32>
    %8 = math.exp %7 : vector<16x128xf32>
    %cst_4 = arith.constant 1.000000e+00 : f32
    %9 = vector.broadcast %cst_4 : f32 to vector<16x128xf32>
    %10 = arith.addf %9, %8 : vector<16x128xf32>
    %cst_5 = arith.constant 0.000000e+00 : f32
    %11 = vector.broadcast %cst_5 : f32 to vector<16x128xf32>
    %12 = arith.maximumf %3, %11 : vector<16x128xf32>
    %13 = arith.mulf %3, %4 : vector<16x128xf32>
    %14 = arith.subf %12, %13 : vector<16x128xf32>
    %15 = math.log1p %8 : vector<16x128xf32>
    %16 = arith.addf %14, %15 : vector<16x128xf32>
    %17 = tpu.reciprocal %10 {approx = true} : vector<16x128xf32> -> vector<16x128xf32>
    %18 = arith.mulf %10, %17 : vector<16x128xf32>
    %cst_6 = arith.constant 2.000000e+00 : f32
    %19 = vector.broadcast %cst_6 : f32 to vector<16x128xf32>
    %20 = arith.subf %19, %18 : vector<16x128xf32>
    %21 = arith.mulf %17, %20 : vector<16x128xf32>
    %cst_7 = arith.constant 0.000000e+00 : f32
    %22 = vector.broadcast %cst_7 : f32 to vector<16x128xf32>
    %23 = arith.cmpf oge, %3, %22 : vector<16x128xf32>
    %cst_8 = arith.constant 1.000000e+00 : f32
    %24 = vector.broadcast %cst_8 : f32 to vector<16x128xf32>
    %25 = arith.select %23, %24, %8 : vector<16x128xi1>, vector<16x128xf32>
    %26 = arith.mulf %25, %21 : vector<16x128xf32>
    %c0_9 = arith.constant 0 : index
    %c0_10 = arith.constant 0 : index
    %c0_11 = arith.constant 0 : index
    %27 = vector.load %arg3[%c0_9, %c0_10, %c0_11] : memref<3x8x128xf32, #tpu.memory_space<vmem>>, vector<1x8x128xf32>
    %28 = vector.shape_cast %27 : vector<1x8x128xf32> to vector<8x128xf32>
    %29 = vector.shape_cast %16 : vector<16x128xf32> to vector<2x8x128xf32>
    %cst_12 = arith.constant dense<0.000000e+00> : vector<8x128xf32>
    %30 = vector.multi_reduction <add>, %29, %cst_12 [0] : vector<2x8x128xf32> to vector<8x128xf32>
    %31 = arith.addf %28, %30 : vector<8x128xf32>
    %c0_13 = arith.constant 0 : index
    %c0_14 = arith.constant 0 : index
    %c0_15 = arith.constant 0 : index
    %32 = vector.load %arg3[%c0_13, %c0_14, %c0_15] : memref<3x8x128xf32, #tpu.memory_space<vmem>>, vector<1x8x128xf32>
    %33 = vector.shape_cast %32 : vector<1x8x128xf32> to vector<8x128xf32>
    %34 = vector.shape_cast %31 : vector<8x128xf32> to vector<1x8x128xf32>
    tpu.vector_store %arg3[%c0_13, %c0_14, %c0_15], %34 {strides = array<i32>} : memref<3x8x128xf32, #tpu.memory_space<vmem>>, vector<1x8x128xf32>,
    %c1 = arith.constant 1 : index
    %c0_16 = arith.constant 0 : index
    %c0_17 = arith.constant 0 : index
    %35 = vector.load %arg3[%c1, %c0_16, %c0_17] : memref<3x8x128xf32, #tpu.memory_space<vmem>>, vector<1x8x128xf32>
    %36 = vector.shape_cast %35 : vector<1x8x128xf32> to vector<8x128xf32>
    %37 = arith.mulf %26, %4 : vector<16x128xf32>
    %38 = vector.shape_cast %37 : vector<16x128xf32> to vector<2x8x128xf32>
    %cst_18 = arith.constant dense<0.000000e+00> : vector<8x128xf32>
    %39 = vector.multi_reduction <add>, %38, %cst_18 [0] : vector<2x8x128xf32> to vector<8x128xf32>
    %40 = arith.addf %36, %39 : vector<8x128xf32>
    %c1_19 = arith.constant 1 : index
    %c0_20 = arith.constant 0 : index
    %c0_21 = arith.constant 0 : index
    %41 = vector.load %arg3[%c1_19, %c0_20, %c0_21] : memref<3x8x128xf32, #tpu.memory_space<vmem>>, vector<1x8x128xf32>
    %42 = vector.shape_cast %41 : vector<1x8x128xf32> to vector<8x128xf32>
    %43 = vector.shape_cast %40 : vector<8x128xf32> to vector<1x8x128xf32>
    tpu.vector_store %arg3[%c1_19, %c0_20, %c0_21], %43 {strides = array<i32>} : memref<3x8x128xf32, #tpu.memory_space<vmem>>, vector<1x8x128xf32>,
    %c2 = arith.constant 2 : index
    %c0_22 = arith.constant 0 : index
    %c0_23 = arith.constant 0 : index
    %44 = vector.load %arg3[%c2, %c0_22, %c0_23] : memref<3x8x128xf32, #tpu.memory_space<vmem>>, vector<1x8x128xf32>
    %45 = vector.shape_cast %44 : vector<1x8x128xf32> to vector<8x128xf32>
    %46 = arith.addf %26, %4 : vector<16x128xf32>
    %47 = vector.shape_cast %46 : vector<16x128xf32> to vector<2x8x128xf32>
    %cst_24 = arith.constant dense<0.000000e+00> : vector<8x128xf32>
    %48 = vector.multi_reduction <add>, %47, %cst_24 [0] : vector<2x8x128xf32> to vector<8x128xf32>
    %49 = arith.addf %45, %48 : vector<8x128xf32>
    %c2_25 = arith.constant 2 : index
    %c0_26 = arith.constant 0 : index
    %c0_27 = arith.constant 0 : index
    %50 = vector.load %arg3[%c2_25, %c0_26, %c0_27] : memref<3x8x128xf32, #tpu.memory_space<vmem>>, vector<1x8x128xf32>
    %51 = vector.shape_cast %50 : vector<1x8x128xf32> to vector<8x128xf32>
    %52 = vector.shape_cast %49 : vector<8x128xf32> to vector<1x8x128xf32>
    tpu.vector_store %arg3[%c2_25, %c0_26, %c0_27], %52 {strides = array<i32>} : memref<3x8x128xf32, #tpu.memory_space<vmem>>, vector<1x8x128xf32>,
    return
  }
  func.func @transform_0(%arg0: i32) -> (i32, i32) {
    %c0_i32 = arith.constant 0 : i32
    %c0_i32_0 = arith.constant 0 : i32
    return %arg0, %c0_i32 : i32, i32
  }
  func.func @transform_1(%arg0: i32) -> (i32, i32) {
    %c0_i32 = arith.constant 0 : i32
    %c0_i32_0 = arith.constant 0 : i32
    return %arg0, %c0_i32 : i32, i32
  }
  func.func @transform_2(%arg0: i32) -> (i32, i32, i32) {
    %c0_i32 = arith.constant 0 : i32
    %c0_i32_0 = arith.constant 0 : i32
    %c0_i32_1 = arith.constant 0 : i32
    %c0_i32_2 = arith.constant 0 : i32
    return %c0_i32, %c0_i32_0, %c0_i32_1 : i32, i32, i32
  }
}

</mosaic_0001>

<bundles_post_ra>
// kernel: tpu_custom_call.1
= control target key start
LH: loop header
LB: loop body
LE: loop exit
PB: predicated region body
PF: predicated region fallthrough
CT: control target
= control target key end

     0   :  { %7 = vsyncpa [#allocation3], 0  ;;  %s292_s0 = inlined_call_operand.hbm [shape: f32[16,128], index: 0, kind: input, shape index: {}]   ;;  %s293_s1 = inlined_call_operand.hbm [shape: f32[16,128], index: 1, kind: input, shape index: {}]   ;;  %s294_s2 = inlined_call_operand.hbm [shape: f32[3,8,128], index: 2, kind: output, shape index: {}]  }
   0x1   :  { %8 = vsyncpa [#allocation6], 0 }
   0x2   :  { %9 = vsyncpa [#allocation4], 0  ;;  %s227_s9 = smov [#allocation2]   ;;  %s155_s13 = scalar_lea.hbm %s292_s0, 256 }
   0x3   :  { %s15_s10 = sshll.u32 %s227_s9, 4  ;;  %p156_p0 = scmp.ne.s32.totalorder %s292_s0, %s155_s13  ;;  %s16_s10 = int_to_ptr.vmem [resolvable:$true] %s15_s10 }
   0x4   :  { %p159_p1 = scmp.lt.u32.totalorder %s155_s13, %s292_s0 }
   0x6   :  { %p161_p2 = pnand %p159_p1, %p156_p0 }
   0x8   :  { %164 = shalt.err (!%p161_p2)
}
   0x9   :  { %s165_s18 = scalar_lea.vmem %s16_s10, 256  ;;  %p170_p4 = scmp.lt.s32.totalorder %s16_s10, %s16_s10 }
   0xa   :  { %p166_p3 = scmp.ne.s32.totalorder %s16_s10, %s165_s18  ;;  %p171_p5 = scmp.lt.s32.totalorder %s165_s18, %s165_s18 }
   0xc   :  { %p172_p6 = por %p171_p5, %p170_p4 }
   0xe   :  { %p173_p7 = pnand %p172_p6, %p166_p3 }
  0x10   :  { %176 = shalt.err (!%p173_p7)
}
  0x11   :  { %s228_s19 = smov 128   ;;  %s229_s20 = smov 8  }
  0x12   :  { %21 = dma.hbm_to_vmem [thread:$0]  %s292_s0, 256, %s16_s10, [#allocation3], %s228_s19, %s228_s19, %s229_s20  }
  0x13   :  { %s230_s23 = smov [#allocation5]   ;;  %s177_s27 = scalar_lea.hbm %s293_s1, 256 }
  0x14   :  { %s27_s24 = sshll.u32 %s230_s23, 4  ;;  %p178_p8 = scmp.ne.s32.totalorder %s293_s1, %s177_s27  ;;  %s28_s24 = int_to_ptr.vmem [resolvable:$true] %s27_s24 }
  0x15   :  { %p181_p9 = scmp.lt.u32.totalorder %s177_s27, %s293_s1 }
  0x17   :  { %p183_p10 = pnand %p181_p9, %p178_p8 }
  0x19   :  { %186 = shalt.err (!%p183_p10)
}
  0x1a   :  { %s187_s4 = scalar_lea.vmem %s28_s24, 256  ;;  %p192_p12 = scmp.lt.s32.totalorder %s28_s24, %s28_s24 }
  0x1b   :  { %p188_p11 = scmp.ne.s32.totalorder %s28_s24, %s187_s4  ;;  %p193_p13 = scmp.lt.s32.totalorder %s187_s4, %s187_s4 }
  0x1d   :  { %p194_p0 = por %p193_p13, %p192_p12 }
  0x1f   :  { %p195_p1 = pnand %p194_p0, %p188_p11 }
  0x21   :  { %198 = shalt.err (!%p195_p1)
}
  0x22   :  { %33 = dma.hbm_to_vmem [thread:$0]  %s293_s1, 256, %s28_s24, [#allocation6], %s228_s19, %s228_s19, %s229_s20  }
  0x23   :  { %221 = dma.done.wait [#allocation3], 256  }
  0x24   :  { %222 = vsyncadd [#allocation3], 4294967040 }
  0x25   :  { %223 = dma.done.wait [#allocation6], 256  }
  0x26   :  { %224 = vsyncadd [#allocation6], 4294967040  ;;  %v47_v0 = vld [vmem:[#allocation2] sm:$0xff]  ;;  %v48_v1 = vld [vmem:[#allocation2 + $0x8] sm:$0xff]  ;;  %s231_s1 = smov [#allocation7]  }
  0x27   :  { %v51_v2 = vand.u32 2147483647, %v47_v0  ;;  %v52_v3 = vand.u32 2147483647, %v48_v1  ;;  %v49_v14 = vld [vmem:[#allocation5] sm:$0xff]  ;;  %v50_v15 = vld [vmem:[#allocation5 + $0x8] sm:$0xff] }
  0x28   :  { %v61_v17 = vmax.f32 %v47_v0, 0.0  ;;  %v63_v18 = vmul.f32 %v49_v14, %v47_v0  ;;  %v62_v21 = vmax.f32 %v48_v1, 0.0  ;;  %v64_v22 = vmul.f32 %v50_v15, %v48_v1  ;;  %s124_s6 = sshll.u32 %s231_s1, 4  ;;  %s125_s6 = int_to_ptr.vmem [resolvable:$true] %s124_s6 }
  0x29   :  { %v53_v4 = vsub.f32 0.0, %v51_v2  ;;  %v54_v5 = vsub.f32 0.0, %v52_v3  ;;  %vm95_vm2 = vcmp.ge.f32.partialorder %v47_v0, 0.0  ;;  %vm96_vm3 = vcmp.ge.f32.partialorder %v48_v1, 0.0  ;;  %s199_s7 = scalar_lea.vmem %s125_s6, 384  ;;  %p204_p3 = scmp.lt.s32.totalorder %s125_s6, %s125_s6 }
  0x2a   :  { %v65_v26 = vsub.f32 %v61_v17, %v63_v18  ;;  %v66_v29 = vsub.f32 %v62_v21, %v64_v22  ;;  %p200_p2 = scmp.ne.s32.totalorder %s125_s6, %s199_s7  ;;  %p205_p4 = scmp.lt.s32.totalorder %s199_s7, %s199_s7 }
  0x2b   :  { %v55_v6 = vmul.f32 1.442695, %v53_v4  ;;  %v57_v7 = vmul.f32 1.442695, %v54_v5 }
  0x2c   :  { %p206_p5 = por %p205_p4, %p204_p3 }
  0x2d   :  { %143 = vpow2.f32 %v55_v6 }
  0x2e   :  { %145 = vpow2.f32 %v57_v7  ;;  %p207_p6 = pnand %p206_p5, %p200_p2 }
  0x37   :  { %v144_v8 = vpop.eup %143 }
  0x38   :  { %v146_v9 = vpop.eup %145  ;;  %v59_v10 = vadd.f32 1.0, %v144_v8  ;;  %v70_v12 = vmul.f32 -0.5, %v144_v8  ;;  %v73_v19 = vand.u32 2147483647, %v144_v8  ;;  %v97_v42 = vsel %vm95_vm2, 1.0, %v144_v8 }
  0x39   :  { %v60_v11 = vadd.f32 1.0, %v146_v9  ;;  %v79_v13 = vmul.f32 -0.5, %v146_v9  ;;  %v82_v23 = vand.u32 2147483647, %v146_v9  ;;  %v98_v45 = vsel %vm96_vm3, 1.0, %v146_v9 }
  0x3a   :  { %147 = vlog2.f32 %v59_v10  ;;  %v71_v16 = vadd.f32 1.0, %v70_v12  ;;  %vm74_vm0 = vcmp.lt.f32.partialorder %v73_v19, 0.0004427343 }
  0x3b   :  { %149 = vlog2.f32 %v60_v11  ;;  %v80_v20 = vadd.f32 1.0, %v79_v13  ;;  %vm83_vm1 = vcmp.lt.f32.partialorder %v82_v23, 0.0004427343 }
  0x3c   :  { %151 = vrcp.f32 %v59_v10  ;;  %v72_v24 = vmul.f32 %v144_v8, %v71_v16 }
  0x3d   :  { %153 = vrcp.f32 %v60_v11  ;;  %v81_v27 = vmul.f32 %v146_v9, %v80_v20 }
  0x44   :  { %v148_v25 = vpop.eup %147 }
  0x45   :  { %v150_v28 = vpop.eup %149  ;;  %v69_v30 = vmul.f32 0.6931472, %v148_v25 }
  0x46   :  { %v152_v31 = vpop.eup %151  ;;  %v78_v32 = vmul.f32 0.6931472, %v150_v28 }
  0x47   :  { %v154_v33 = vpop.eup %153  ;;  %v75_v34 = vsel %vm74_vm0, %v72_v24, %v69_v30  ;;  %v89_v35 = vmul.f32 %v152_v31, %v59_v10 }
  0x48   :  { %v84_v36 = vsel %vm83_vm1, %v81_v27, %v78_v32  ;;  %v85_v37 = vadd.f32 %v75_v34, %v65_v26  ;;  %v90_v38 = vmul.f32 %v154_v33, %v60_v11 }
  0x49   :  { %v86_v39 = vadd.f32 %v84_v36, %v66_v29  ;;  %v91_v40 = vsub.f32 2.0, %v89_v35 }
  0x4a   :  { %v92_v41 = vsub.f32 2.0, %v90_v38 }
  0x4b   :  { %v102_v43 = vadd.f32 %v86_v39, %v85_v37  ;;  %v93_v44 = vmul.f32 %v152_v31, %v91_v40 }
  0x4c   :  { %v94_v46 = vmul.f32 %v154_v33, %v92_v41 }
  0x4d   :  { %v99_v47 = vmul.f32 %v97_v42, %v93_v44  ;;  %104 = vst [vmem:[#allocation7] sm:$0xff] %v102_v43 }
  0x4e   :  { %v100_v48 = vmul.f32 %v98_v45, %v94_v46 }
  0x4f   :  { %v107_v49 = vmul.f32 %v99_v47, %v49_v14  ;;  %v114_v50 = vadd.f32 %v99_v47, %v49_v14 }
  0x50   :  { %v108_v51 = vmul.f32 %v100_v48, %v50_v15  ;;  %v115_v52 = vadd.f32 %v100_v48, %v50_v15 }
  0x52   :  { %v109_v53 = vadd.f32 %v108_v51, %v107_v49  ;;  %v116_v54 = vadd.f32 %v115_v52, %v114_v50 }
  0x54   :  { %111 = vst [vmem:[#allocation7 + $0x8] sm:$0xff] %v109_v53  ;;  %118 = vst [vmem:[#allocation7 + $0x10] sm:$0xff] %v116_v54 }
  0x55   :  { %210 = shalt.err (!%p207_p6)
}
  0x56   :  { %s211_s10 = scalar_lea.hbm %s294_s2, 384 }
  0x57   :  { %p212_p7 = scmp.ne.s32.totalorder %s294_s2, %s211_s10  ;;  %p215_p8 = scmp.lt.u32.totalorder %s211_s10, %s294_s2 }
  0x59   :  { %p217_p9 = pnand %p215_p8, %p212_p7 }
  0x5b   :  { %220 = shalt.err (!%p217_p9)
}
  0x5c   :  { %130 = dma.vmem_to_hbm [thread:$0]  %s125_s6, 384, %s294_s2, [#allocation4], %s228_s19, %s228_s19, %s229_s20  }
  0x5d   :  { %225 = dma.done.wait [#allocation4], 384  }
  0x5e   :  { %226 = vsyncadd [#allocation4], 4294966912 }
  0x5f   :  { %134 = vsyncpa [#allocation3], 1 }
  0x60   :  { %135 = vsyncpa [#allocation6], 1 }
  0x61   :  { %136 = vsyncpa [#allocation4], 1 }

</bundles_post_ra>
